<compile_context>
chip_gen: v5e
topology: v5e:2x2
jax: 0.10.0
libtpu: 0.0.40
codegen_flags: <defaults>
</compile_context>

<pallas_src>
import jax
import jax.numpy as jnp
from jax import lax
from jax.experimental import pallas as pl
from jax.experimental.pallas import tpu as pltpu


def bbox_head_kernel(x_ref, w_ref, b_ref, o_ref):
    # x_ref: (n_blk, C_in, tile_hw)   lane axis = spatial positions (dense loads)
    # w_ref: (C_in, C_out)            resident 1x1-conv weight (pre-transposed)
    # b_ref: (1, C_out)               resident bias
    # o_ref: (n_blk, tile_hw, C_out)  NHWC-style layout -> final reshape is free
    w = w_ref[...]
    b = b_ref[...]
    for n in range(x_ref.shape[0]):          # n_blk <= 8, unrolled at trace time
        # (C_in, tile_hw) and (C_in, C_out) contracted on C_in -> (tile_hw, C_out)
        acc = lax.dot_general(
            x_ref[n], w,
            dimension_numbers=(((0,), (0,)), ((), ())),
            preferred_element_type=jnp.float32)
        o_ref[n] = (acc + b).astype(o_ref.dtype)


def bbox_head_forward(x_nchw, weight, bias, num_anchors=3, *, tile_hw=8192):
    """Equivalent of BboxHead.forward.

    x_nchw : (N, C_in, H, W)      float32
    weight : (C_out, C_in, 1, 1)  PyTorch conv weight layout
    bias   : (C_out,)
    returns: (N, H*W*num_anchors, 4)
    """
    N, C_in, H, W = x_nchw.shape
    C_out = weight.shape[0]
    assert C_out == num_anchors * 4
    HW = H * W

    # Free views / tiny reshapes only — no big-tensor copies in the wrapper.
    x3 = x_nchw.reshape(N, C_in, HW)         # contiguous view of NCHW
    w_t = weight.reshape(C_out, C_in).T      # (C_in, C_out), tiny
    b_row = bias.reshape(1, C_out)

    # Fold small batches into one block (fewer, larger grid steps / DMAs).
    n_blk = N if N <= 8 else 1
    n_outer = N // n_blk

    # ---- tile_hw selection (multiple of 128, NO input padding) ----
    hw128 = pl.cdiv(HW, 128) * 128
    tile_hw = max(128, min(tile_hw, hw128))
    # VMEM cap: the (tile_hw, 12) out block is lane-padded to 128 lanes in VMEM,
    # so per-step footprint ~ n_blk*tile_hw*(128B in + 512B out); keeping
    # n_blk*tile_hw <= 8192 keeps the double-buffered total ~10 MiB (< v5e's
    # 16 MiB default scoped VMEM, far under v6e/v7x limits).
    max_pos = 8192
    tile_hw = min(tile_hw, max(128, ((max_pos // n_blk) // 128) * 128))
    # v7x megacore: keep >= 2 parallel grid steps when the batch axis gives none.
    if n_outer == 1 and hw128 >= 256 and pl.cdiv(HW, tile_hw) < 2:
        tile_hw = max(128, ((hw128 // 2) // 128) * 128)

    num_hw_tiles = pl.cdiv(HW, tile_hw)      # ragged last block handled by Pallas
    grid = (n_outer, num_hw_tiles)

    out_dtype = x_nchw.dtype
    itemsize = jnp.dtype(out_dtype).itemsize

    out3 = pl.pallas_call(
        bbox_head_kernel,
        out_shape=jax.ShapeDtypeStruct((N, HW, C_out), out_dtype),
        grid_spec=pltpu.PrefetchScalarGridSpec(
            num_scalar_prefetch=0,
            grid=grid,
            in_specs=[
                pl.BlockSpec((n_blk, C_in, tile_hw), lambda nb, j: (nb, 0, j)),
                pl.BlockSpec((C_in, C_out), lambda nb, j: (0, 0)),
                pl.BlockSpec((1, C_out), lambda nb, j: (0, 0)),
            ],
            out_specs=pl.BlockSpec((n_blk, tile_hw, C_out),
                                   lambda nb, j: (nb, j, 0)),
        ),
        compiler_params=pltpu.CompilerParams(
            dimension_semantics=("parallel", "parallel"),
        ),
        cost_estimate=pl.CostEstimate(
            flops=2 * N * HW * C_in * C_out,
            transcendentals=0,
            bytes_accessed=itemsize * (N * HW * C_in + N * HW * C_out
                                       + C_in * C_out + C_out),
        ),
    )(x3, w_t, b_row)

    # (N, HW, C_out) -> (N, HW*num_anchors, 4): pure view on contiguous data
    # (matches torch's permute(0,2,3,1).contiguous().view(N, -1, 4)).
    return out3.reshape(N, HW * num_anchors, 4)


if __name__ == "__main__":
    key = jax.random.PRNGKey(0)
    k_x, k_w, k_b = jax.random.split(key, 3)

    # Small shapes consistent with the module: batch=2, inchannels=32,
    # spatial=16x16 (H*W=256), num_anchors=3 -> C_out=12.
    N, C_in, H, W = 2, 32, 16, 16
    num_anchors = 3
    C_out = num_anchors * 4

    x = jax.random.normal(k_x, (N, C_in, H, W), dtype=jnp.float32)
    weight = jax.random.normal(k_w, (C_out, C_in, 1, 1), dtype=jnp.float32) * 0.05
    bias = jax.random.normal(k_b, (C_out,), dtype=jnp.float32) * 0.01

    fwd = jax.jit(lambda a, w, b: bbox_head_forward(a, w, b,
                                                    num_anchors=num_anchors))
    out = jax.block_until_ready(fwd(x, weight, bias))

    # Pure-JAX reference of the same math (conv1x1 + permute(0,2,3,1) + view).
    ref = jnp.einsum("nchw,oc->nhwo", x, weight.reshape(C_out, C_in),
                     precision=lax.Precision.HIGHEST) + bias
    ref = ref.reshape(N, H * W * num_anchors, 4)

    assert out.shape == (N, H * W * num_anchors, 4)
    assert jnp.allclose(out, ref, atol=1e-4, rtol=1e-4), "mismatch vs reference"

    print("KERNEL_OK")
</pallas_src>

<mosaic_0001>
module attributes {stable_mosaic.version = 11 : i64} {
  func.func @bbox_head_kernel(%arg0: i32, %arg1: i32, %arg2: memref<2x32x128xf32, #tpu.memory_space<vmem>>, %arg3: memref<32x12xf32, #tpu.memory_space<vmem>>, %arg4: memref<1x12xf32, #tpu.memory_space<vmem>>, %arg5: memref<2x128x12xf32, #tpu.memory_space<vmem>>) attributes {dimension_semantics = [#tpu.dimension_semantics<parallel>, #tpu.dimension_semantics<parallel>], iteration_bounds = array<i64: 1, 2>, scalar_prefetch = 0 : i64, scratch_operands = 0 : i64, tpu.core_type = #tpu.core_type<tc>, window_params = [{transform_indices = @transform_0, window_bounds = array<i64: 2, 32, 128>}, {pipeline_mode = #tpu.pipeline_mode<synchronous>, transform_indices = @transform_1, window_bounds = array<i64: 32, 12>}, {pipeline_mode = #tpu.pipeline_mode<synchronous>, transform_indices = @transform_2, window_bounds = array<i64: 1, 12>}, {transform_indices = @transform_3, window_bounds = array<i64: 2, 128, 12>}]} {
    %c0 = arith.constant 0 : index
    %c0_0 = arith.constant 0 : index
    %0 = vector.load %arg3[%c0, %c0_0] : memref<32x12xf32, #tpu.memory_space<vmem>>, vector<32x12xf32>
    %c0_1 = arith.constant 0 : index
    %c0_2 = arith.constant 0 : index
    %1 = vector.load %arg4[%c0_1, %c0_2] : memref<1x12xf32, #tpu.memory_space<vmem>>, vector<1x12xf32>
    %c0_3 = arith.constant 0 : index
    %c0_4 = arith.constant 0 : index
    %c0_5 = arith.constant 0 : index
    %2 = vector.load %arg2[%c0_3, %c0_4, %c0_5] : memref<2x32x128xf32, #tpu.memory_space<vmem>>, vector<1x32x128xf32>
    %3 = vector.shape_cast %2 : vector<1x32x128xf32> to vector<32x128xf32>
    %cst = arith.constant dense<0.000000e+00> : vector<128x12xf32>
    %4 = tpu.matmul %3, %0, %cst {dimension_numbers = #tpu.dot_dimension_numbers<[0], [0], [1], [1], [0, 1, 1, 1], [], []>} : vector<32x128xf32>, vector<32x12xf32>, vector<128x12xf32> -> vector<128x12xf32>
    %5 = vector.broadcast %1 : vector<1x12xf32> to vector<128x12xf32>
    %6 = arith.addf %4, %5 : vector<128x12xf32>
    %c0_6 = arith.constant 0 : index
    %c0_7 = arith.constant 0 : index
    %c0_8 = arith.constant 0 : index
    %7 = vector.load %arg5[%c0_6, %c0_7, %c0_8] : memref<2x128x12xf32, #tpu.memory_space<vmem>>, vector<1x128x12xf32>
    %8 = vector.shape_cast %7 : vector<1x128x12xf32> to vector<128x12xf32>
    %9 = vector.shape_cast %6 : vector<128x12xf32> to vector<1x128x12xf32>
    tpu.vector_store %arg5[%c0_6, %c0_7, %c0_8], %9 {strides = array<i32>} : memref<2x128x12xf32, #tpu.memory_space<vmem>>, vector<1x128x12xf32>,
    %c1 = arith.constant 1 : index
    %c0_9 = arith.constant 0 : index
    %c0_10 = arith.constant 0 : index
    %10 = vector.load %arg2[%c1, %c0_9, %c0_10] : memref<2x32x128xf32, #tpu.memory_space<vmem>>, vector<1x32x128xf32>
    %11 = vector.shape_cast %10 : vector<1x32x128xf32> to vector<32x128xf32>
    %cst_11 = arith.constant dense<0.000000e+00> : vector<128x12xf32>
    %12 = tpu.matmul %11, %0, %cst_11 {dimension_numbers = #tpu.dot_dimension_numbers<[0], [0], [1], [1], [0, 1, 1, 1], [], []>} : vector<32x128xf32>, vector<32x12xf32>, vector<128x12xf32> -> vector<128x12xf32>
    %13 = vector.broadcast %1 : vector<1x12xf32> to vector<128x12xf32>
    %14 = arith.addf %12, %13 : vector<128x12xf32>
    %c1_12 = arith.constant 1 : index
    %c0_13 = arith.constant 0 : index
    %c0_14 = arith.constant 0 : index
    %15 = vector.load %arg5[%c1_12, %c0_13, %c0_14] : memref<2x128x12xf32, #tpu.memory_space<vmem>>, vector<1x128x12xf32>
    %16 = vector.shape_cast %15 : vector<1x128x12xf32> to vector<128x12xf32>
    %17 = vector.shape_cast %14 : vector<128x12xf32> to vector<1x128x12xf32>
    tpu.vector_store %arg5[%c1_12, %c0_13, %c0_14], %17 {strides = array<i32>} : memref<2x128x12xf32, #tpu.memory_space<vmem>>, vector<1x128x12xf32>,
    return
  }
  func.func @transform_0(%arg0: i32, %arg1: i32) -> (i32, i32, i32) {
    %c0_i32 = arith.constant 0 : i32
    %c0_i32_0 = arith.constant 0 : i32
    return %arg0, %c0_i32, %arg1 : i32, i32, i32
  }
  func.func @transform_1(%arg0: i32, %arg1: i32) -> (i32, i32) {
    %c0_i32 = arith.constant 0 : i32
    %c0_i32_0 = arith.constant 0 : i32
    %c0_i32_1 = arith.constant 0 : i32
    return %c0_i32, %c0_i32_0 : i32, i32
  }
  func.func @transform_2(%arg0: i32, %arg1: i32) -> (i32, i32) {
    %c0_i32 = arith.constant 0 : i32
    %c0_i32_0 = arith.constant 0 : i32
    %c0_i32_1 = arith.constant 0 : i32
    return %c0_i32, %c0_i32_0 : i32, i32
  }
  func.func @transform_3(%arg0: i32, %arg1: i32) -> (i32, i32, i32) {
    %c0_i32 = arith.constant 0 : i32
    %c0_i32_0 = arith.constant 0 : i32
    return %arg0, %arg1, %c0_i32 : i32, i32, i32
  }
}

</mosaic_0001>

<bundles_post_ra>
// kernel: _lambda_.1
= control target key start
LH: loop header
LB: loop body
LE: loop exit
PB: predicated region body
PF: predicated region fallthrough
CT: control target
= control target key end

     0   :  { %s1009_s12 = smov 0   ;;  %s1011_s13 = smov 0   ;;  %s1298_s0 = inlined_call_operand.vmem [shape: f32[2,32,256], index: 0, kind: input, shape index: {}]   ;;  %s1299_s1 = inlined_call_operand.vmem [shape: f32[32,12], index: 1, kind: input, shape index: {}]   ;;  %s1300_s2 = inlined_call_operand.vmem [shape: f32[1,12], index: 2, kind: input, shape index: {}]   ;;  %s1301_s3 = inlined_call_operand.vmem [shape: f32[2,256,12], index: 3, kind: output, shape index: {}]  }
   0x1   :  { %s1013_s14 = smov 0   ;;  %s1015_s15 = smov 0  }
   0x2   :  { %s1017_s16 = smov 0  }
   0x3 LB: > { %s22_s17 = sadd.s32 1, %s983_s15  ;;  %s832_s18 = sadd.s32 4294967295, %s987_s16   ;;  %s987_s16 = sphi %s1017_s16, %s13_s16   ;;  %s983_s15 = sphi %s1015_s15, %s1306_s15   ;;  %s979_s14 = sphi %s1013_s14, %s1305_s14   ;;  %s975_s13 = sphi %s1011_s13, %s1304_s13   ;;  %s971_s12 = sphi %s1009_s12, %s1303_s12  }
   0x4   : > { %p23_p0 = scmp.ge.s32.totalorder %s22_s17, 2  ;;  %p41_p1 = scmp.ne.s32.totalorder %s975_s13, %s971_s12 }
   0x5   : > { %p42_p2 = scmp.eq.s32.totalorder %s987_s16, 0  ;;  %p115_p4 = scmp.eq.s32.totalorder %s832_s18, 1 }
   0x6   : > { %s1308_s17 = smov (%p23_p0, %s22_s17), 0  ;;  %s34_s20 = sadd.s32 1, %s975_s13 }
   0x7   : > { %p43_p3 = por %p42_p2, %p41_p1  ;;  %s30_s19 = ssub.s32 %s983_s15, %s1308_s17 }
   0x8   : > { %p32_p5 = scmp.eq.s32.totalorder %s30_s19, 0  ;;  %p1044_p6 = por %p115_p4, %p41_p1 }
   0x9   : > { %p835_p7 = scmp.ge.s32.totalorder %s987_s16, 2 }
   0xa   : > { %s1049_s22 = scalar_select %p32_p5, %s975_s13, %s34_s20  }
   0xb   : > { %143 = sbr.rel (%p835_p7) target bundleno = 28 (0x1c), region = 24 }
  0x10   : > { %146 = sbr.rel (!%p43_p3) target bundleno = 28 (0x1c), region = 28  ;;  %s148_s23 = sand.u32 (%p43_p3), 1, %s975_s13  }
  0x11   : > { %s837_s24 = sshll.u32 (%p43_p3), %s983_s15, 3  ;;  %s836_s25 = sshll.u32 (%p43_p3), %s148_s23, 6 }
  0x12   : > { %s155_s28 = scalar_lea.vmem (%p43_p3), %s1298_s0, %s837_s24  ;;  %s150_s29 = scalar_lea.vmem (%p43_p3), [#allocation2], %s836_s25 }
  0x13   : > { %v198_v0 = vld [vmem:[%s155_s28] sm:$0xff] (%p43_p3)  ;;  %v200_v1 = vld [vmem:[%s155_s28 + $0x10] sm:$0xff] (%p43_p3) }
  0x14   : > { %v202_v2 = vld [vmem:[%s155_s28 + $0x20] sm:$0xff] (%p43_p3)  ;;  %199 = vst [vmem:[%s150_s29] sm:$0xff] (%p43_p3), %v198_v0  ;;  %v204_v3 = vld [vmem:[%s155_s28 + $0x30] sm:$0xff] (%p43_p3) }
  0x15   : > { %201 = vst [vmem:[%s150_s29 + $0x8] sm:$0xff] %v200_v1  ;;  %v206_v4 = vld [vmem:[%s155_s28 + $0x40] sm:$0xff]  ;;  %v208_v5 = vld [vmem:[%s155_s28 + $0x50] sm:$0xff] }
  0x16   : > { %203 = vst [vmem:[%s150_s29 + $0x10] sm:$0xff] %v202_v2  ;;  %v210_v6 = vld [vmem:[%s155_s28 + $0x60] sm:$0xff]  ;;  %v212_v7 = vld [vmem:[%s155_s28 + $0x70] sm:$0xff] }
  0x17   : > { %205 = vst [vmem:[%s150_s29 + $0x18] sm:$0xff] %v204_v3 }
  0x18   : > { %207 = vst [vmem:[%s150_s29 + $0x20] sm:$0xff] %v206_v4 }
  0x19   : > { %209 = vst [vmem:[%s150_s29 + $0x28] sm:$0xff] %v208_v5 }
  0x1a   : > { %211 = vst [vmem:[%s150_s29 + $0x30] sm:$0xff] %v210_v6 }
  0x1b   : > { %213 = vst [vmem:[%s150_s29 + $0x38] sm:$0xff] %v212_v7 }
  0x1c PF: > { %p838_p8 = scmp.ge.s32.totalorder %s987_s16, 1  ;;  %p218_p9 = scmp.lt.s32.totalorder %s987_s16, 3 }
  0x1e   : > { %p219_p10 = pnand %p838_p8, %p218_p9 }
  0x1f   : > { %s225_s30 = sand.u32 (!%p219_p10), 1, %s971_s12  }
  0x20   : > { %222 = sbr.rel (%p219_p10) target bundleno = 470 (0x1d6), region = 66  ;;  %s839_s8 = sshll.u32 (!%p219_p10), %s225_s30, 6 }
  0x21   : > { %s227_s11 = scalar_lea.vmem (!%p219_p10), [#allocation2], %s839_s8  ;;  %s840_s20 = sshll.u32 (!%p219_p10), %s225_s30, 8 }
  0x22   : > { %s1115_s25 = scalar_lea.vmem (!%p219_p10), [#allocation3], %s840_s20 }
  0x25   : > { %v253_v8 = vld [vmem:[%s1299_s1 + $0x18] sm:$0xff]  ;;  %v252_v9 = vld [vmem:[%s1299_s1 + $0x10] sm:$0xff]  ;;  %v251_v10 = vld [vmem:[%s1299_s1 + $0x8] sm:$0xff]  ;;  %vm294_vm0 = vcmask 261120   ;;  %vm408_vm1 = vcmask 97280   ;;  %s898_s12 = sshll.u32 (%p1044_p6), %s979_s14, 7 }
  0x26   : > { %355 = vmatpush.msra.mxu0 %v253_v8  ;;  %522 = vmatpush.msra.mxu1 %v253_v8  ;;  %v857_v11 = vld [vmem:[%s227_s11 + $0x20] sm:$0xff]  ;;  %v858_v14 = vld [vmem:[%s227_s11 + $0x28] sm:$0xff]  ;;  %v859_v16 = vld [vmem:[%s227_s11 + $0x30] sm:$0xff]  ;;  %s1219_s28 = scalar_lea.vmem (%p1044_p6), %s1301_s3, %s898_s12 }
  0x27   : > { %899 = vmatpush.msra.mxu2 %v253_v8  ;;  %903 = vmatpush.msra.mxu3 %v253_v8  ;;  %v255_v12 = vld [vmem:[%s227_s11] sm:$0xff]  ;;  %v256_v15 = vld [vmem:[%s227_s11 + $0x8] sm:$0xff]  ;;  %v257_v17 = vld [vmem:[%s227_s11 + $0x10] sm:$0xff] }
  0x28   : > { %356 = vmatpush.msra.mxu0 %v252_v9  ;;  %523 = vmatpush.msra.mxu1 %v252_v9  ;;  %v250_v13 = vld [vmem:[%s1299_s1] sm:$0xff]  ;;  %v860_v18 = vld [vmem:[%s227_s11 + $0x38] sm:$0xff] }
  0x29   : > { %430 = vxpose.xlu1.b32.start [1/4] (short) %v857_v11, 128  ;;  %262 = vxpose.xlu0.b32.start [1/4] (short) %v255_v12, 128  ;;  %v258_v19 = vld [vmem:[%s227_s11 + $0x18] sm:$0xff]  ;;  %v1111_v52 = vld [vmem:[%s1300_s2] ss:$0 sm:$0xff] }
  0x2a   : > { %357 = vmatpush.msra.mxu0 %v251_v10  ;;  %524 = vmatpush.msra.mxu1 %v251_v10 }
  0x2b   : > { %900 = vmatpush.msra.mxu2 %v252_v9  ;;  %904 = vmatpush.msra.mxu3 %v252_v9 }
  0x2c   : > { %358 = vmatpush.msra.mxu0 %v250_v13  ;;  %525 = vmatpush.msra.mxu1 %v250_v13 }
  0x2d   : > { %901 = vmatpush.msra.mxu2 %v251_v10  ;;  %905 = vmatpush.msra.mxu3 %v251_v10 }
  0x2f   : > { %902 = vmatpush.msra.mxu2 %v250_v13  ;;  %906 = vmatpush.msra.mxu3 %v250_v13 }
  0x31   : > { %431 = vxpose.xlu1.b32.cont [2/4] (short) %v858_v14, 128  ;;  %263 = vxpose.xlu0.b32.cont [2/4] (short) %v256_v15, 128 }
  0x39   : > { %432 = vxpose.xlu1.b32.cont [3/4] (short) %v859_v16, 128  ;;  %264 = vxpose.xlu0.b32.cont [3/4] (short) %v257_v17, 128 }
  0x41   : > { %433 = vxpose.xlu1.b32.end [4/4] (short) %v860_v18, 128  ;;  %265 = vxpose.xlu0.b32.end [4/4] (short) %v258_v19, 128 }
  0xcd   : > { %v446_v20 = vpop.trf.xlu1  ;;  %v278_v21 = vpop.trf.xlu0 }
  0xce   : > { %841 = vmatmul.msk.f32.vlgmr.msra.gmra.mxu0 %vm294_vm0, %v278_v21  ;;  %861 = vmatmul.msk.f32.vlgmr.msra.gmra.mxu1 %vm294_vm0, %v446_v20 }
  0xd5   : > { %v447_v22 = vpop.trf.xlu1  ;;  %v279_v23 = vpop.trf.xlu0 }
  0xd6   : > { %842 = vmatmul.msk.f32.gmra.mxu0 %vm294_vm0, %v279_v23  ;;  %862 = vmatmul.msk.f32.gmra.mxu1 %vm294_vm0, %v447_v22 }
  0xdd   : > { %v448_v24 = vpop.trf.xlu1  ;;  %v280_v25 = vpop.trf.xlu0 }
  0xde   : > { %843 = vmatmul.msk.f32.gmra.mxu0 %vm294_vm0, %v280_v25  ;;  %863 = vmatmul.msk.f32.gmra.mxu1 %vm294_vm0, %v448_v24 }
  0xe5   : > { %v449_v26 = vpop.trf.xlu1  ;;  %v281_v27 = vpop.trf.xlu0 }
  0xe6   : > { %844 = vmatmul.msk.f32.gmra.mxu0 %vm294_vm0, %v281_v27  ;;  %864 = vmatmul.msk.f32.gmra.mxu1 %vm294_vm0, %v449_v26 }
  0xed   : > { %v450_v28 = vpop.trf.xlu1  ;;  %v282_v29 = vpop.trf.xlu0 }
  0xee   : > { %845 = vmatmul.msk.f32.gmra.mxu0 %vm294_vm0, %v282_v29  ;;  %865 = vmatmul.msk.f32.gmra.mxu1 %vm294_vm0, %v450_v28 }
  0xf5   : > { %v451_v30 = vpop.trf.xlu1  ;;  %v283_v31 = vpop.trf.xlu0 }
  0xf6   : > { %846 = vmatmul.msk.f32.gmra.mxu0 %vm294_vm0, %v283_v31  ;;  %866 = vmatmul.msk.f32.gmra.mxu1 %vm294_vm0, %v451_v30 }
  0xfd   : > { %v452_v32 = vpop.trf.xlu1  ;;  %v284_v33 = vpop.trf.xlu0 }
  0xfe   : > { %847 = vmatmul.msk.f32.gmra.mxu0 %vm294_vm0, %v284_v33  ;;  %867 = vmatmul.msk.f32.gmra.mxu1 %vm294_vm0, %v452_v32 }
 0x105   : > { %v453_v34 = vpop.trf.xlu1  ;;  %v285_v35 = vpop.trf.xlu0 }
 0x106   : > { %848 = vmatmul.msk.f32.gmra.mxu0 %vm294_vm0, %v285_v35  ;;  %868 = vmatmul.msk.f32.gmra.mxu1 %vm294_vm0, %v453_v34 }
 0x10d   : > { %v454_v36 = vpop.trf.xlu1  ;;  %v286_v37 = vpop.trf.xlu0 }
 0x10e   : > { %849 = vmatmul.msk.f32.vlgmr.msra.gmra.mxu2 %vm294_vm0, %v286_v37  ;;  %869 = vmatmul.msk.f32.vlgmr.msra.gmra.mxu3 %vm294_vm0, %v454_v36 }
 0x115   : > { %v455_v38 = vpop.trf.xlu1  ;;  %v287_v39 = vpop.trf.xlu0 }
 0x116   : > { %850 = vmatmul.msk.f32.gmra.mxu2 %vm294_vm0, %v287_v39  ;;  %870 = vmatmul.msk.f32.gmra.mxu3 %vm294_vm0, %v455_v38 }
 0x11d   : > { %v456_v40 = vpop.trf.xlu1  ;;  %v288_v41 = vpop.trf.xlu0 }
 0x11e   : > { %851 = vmatmul.msk.f32.gmra.mxu2 %vm294_vm0, %v288_v41  ;;  %871 = vmatmul.msk.f32.gmra.mxu3 %vm294_vm0, %v456_v40 }
 0x125   : > { %v457_v42 = vpop.trf.xlu1  ;;  %v289_v43 = vpop.trf.xlu0 }
 0x126   : > { %852 = vmatmul.msk.f32.gmra.mxu2 %vm294_vm0, %v289_v43  ;;  %872 = vmatmul.msk.f32.gmra.mxu3 %vm294_vm0, %v457_v42 }
 0x12d   : > { %v458_v44 = vpop.trf.xlu1  ;;  %v290_v45 = vpop.trf.xlu0 }
 0x12e   : > { %853 = vmatmul.msk.f32.gmra.mxu2 %vm294_vm0, %v290_v45  ;;  %873 = vmatmul.msk.f32.gmra.mxu3 %vm294_vm0, %v458_v44 }
 0x135   : > { %v459_v46 = vpop.trf.xlu1  ;;  %v291_v47 = vpop.trf.xlu0 }
 0x136   : > { %854 = vmatmul.msk.f32.gmra.mxu2 %vm294_vm0, %v291_v47  ;;  %874 = vmatmul.msk.f32.gmra.mxu3 %vm294_vm0, %v459_v46 }
 0x13d   : > { %v460_v48 = vpop.trf.xlu1  ;;  %v292_v49 = vpop.trf.xlu0 }
 0x13e   : > { %855 = vmatmul.msk.f32.gmra.mxu2 %vm294_vm0, %v292_v49  ;;  %875 = vmatmul.msk.f32.gmra.mxu3 %vm294_vm0, %v460_v48 }
 0x145   : > { %v461_v50 = vpop.trf.xlu1  ;;  %v293_v51 = vpop.trf.xlu0 }
 0x146   : > { %856 = vmatmul.msk.f32.gmra.mxu2 %vm294_vm0, %v293_v51  ;;  %876 = vmatmul.msk.f32.gmra.mxu3 %vm294_vm0, %v461_v50 }
 0x14b   : > { %v360_v53 = vpop.f32.mrf.mxu0  ;;  %v527_v54 = vpop.f32.mrf.mxu1 }
 0x14c   : > { %v361_v55 = vadd.f32 %v1111_v52, %v360_v53  ;;  %v528_v56 = vadd.f32 %v1111_v52, %v527_v54 }
 0x14e   : > { %409 = vst.msk [vmem:[%s1115_s25] sm:$0xff] %vm408_vm1, %v361_v55 }
 0x14f   : > { %877 = vst.msk [vmem:[%s1115_s25 + $0x80] sm:$0xff] %vm408_vm1, %v528_v56 }
 0x153   : > { %v363_v57 = vpop.f32.mrf.mxu0  ;;  %v530_v58 = vpop.f32.mrf.mxu1 }
 0x154   : > { %v364_v59 = vadd.f32 %v1111_v52, %v363_v57  ;;  %v531_v60 = vadd.f32 %v1111_v52, %v530_v58 }
 0x155   : > { %v695_v54 = vld [vmem:[%s1115_s25] sm:$0xff] (%p1044_p6) }
 0x156   : > { %410 = vst.msk [vmem:[%s1115_s25 + $0x8] sm:$0xff] %vm408_vm1, %v364_v59 }
 0x157   : > { %878 = vst.msk [vmem:[%s1115_s25 + $0x88] sm:$0xff] %vm408_vm1, %v531_v60 }
 0x158   : > { %696 = vst [vmem:[%s1219_s28] sm:$0xff] (%p1044_p6), %v695_v54 }
 0x15b   : > { %v366_v61 = vpop.f32.mrf.mxu0  ;;  %v533_v62 = vpop.f32.mrf.mxu1 }
 0x15c   : > { %v367_v63 = vadd.f32 %v1111_v52, %v366_v61  ;;  %v534_v0 = vadd.f32 %v1111_v52, %v533_v62 }
 0x15e   : > { %411 = vst.msk [vmem:[%s1115_s25 + $0x10] sm:$0xff] %vm408_vm1, %v367_v63 }
 0x15f   : > { %879 = vst.msk [vmem:[%s1115_s25 + $0x90] sm:$0xff] %vm408_vm1, %v534_v0 }
 0x163   : > { %v369_v1 = vpop.f32.mrf.mxu0  ;;  %v536_v2 = vpop.f32.mrf.mxu1 }
 0x164   : > { %v370_v3 = vadd.f32 %v1111_v52, %v369_v1  ;;  %v537_v4 = vadd.f32 %v1111_v52, %v536_v2 }
 0x165   : > { %v699_v55 = vld [vmem:[%s1115_s25 + $0x10] sm:$0xff] (%p1044_p6) }
 0x166   : > { %412 = vst.msk [vmem:[%s1115_s25 + $0x18] sm:$0xff] %vm408_vm1, %v370_v3 }
 0x167   : > { %880 = vst.msk [vmem:[%s1115_s25 + $0x98] sm:$0xff] %vm408_vm1, %v537_v4 }
 0x168   : > { %700 = vst [vmem:[%s1219_s28 + $0x10] sm:$0xff] (%p1044_p6), %v699_v55 }
 0x16b   : > { %v372_v5 = vpop.f32.mrf.mxu0  ;;  %v539_v6 = vpop.f32.mrf.mxu1 }
 0x16c   : > { %v373_v7 = vadd.f32 %v1111_v52, %v372_v5  ;;  %v540_v8 = vadd.f32 %v1111_v52, %v539_v6  ;;  %v727_v5 = vld [vmem:[%s1115_s25 + $0x80] sm:$0xff] (%p1044_p6)  ;;  %v729_v6 = vld [vmem:[%s1115_s25 + $0x88] sm:$0xff] (%p1044_p6) }
 0x16d   : > { %v701_v56 = vld [vmem:[%s1115_s25 + $0x18] sm:$0xff] (%p1044_p6)  ;;  %728 = vst [vmem:[%s1219_s28 + $0x100] sm:$0xff] (%p1044_p6), %v727_v5 }
 0x16e   : > { %413 = vst.msk [vmem:[%s1115_s25 + $0x20] sm:$0xff] %vm408_vm1, %v373_v7  ;;  %v731_v7 = vld [vmem:[%s1115_s25 + $0x90] sm:$0xff] (%p1044_p6) }
 0x16f   : > { %881 = vst.msk [vmem:[%s1115_s25 + $0xa0] sm:$0xff] %vm408_vm1, %v540_v8  ;;  %v733_v8 = vld [vmem:[%s1115_s25 + $0x98] sm:$0xff] (%p1044_p6) }
 0x170   : > { %702 = vst [vmem:[%s1219_s28 + $0x18] sm:$0xff] (%p1044_p6), %v701_v56 }
 0x171   : > { %730 = vst [vmem:[%s1219_s28 + $0x108] sm:$0xff] (%p1044_p6), %v729_v6 }
 0x172   : > { %732 = vst [vmem:[%s1219_s28 + $0x110] sm:$0xff] (%p1044_p6), %v731_v7 }
 0x173   : > { %v375_v9 = vpop.f32.mrf.mxu0  ;;  %v542_v10 = vpop.f32.mrf.mxu1  ;;  %734 = vst [vmem:[%s1219_s28 + $0x118] sm:$0xff] (%p1044_p6), %v733_v8 }
 0x174   : > { %v376_v11 = vadd.f32 %v1111_v52, %v375_v9  ;;  %v543_v12 = vadd.f32 %v1111_v52, %v542_v10 }
 0x175   : > { %v703_v57 = vld [vmem:[%s1115_s25 + $0x20] sm:$0xff] (%p1044_p6) }
 0x176   : > { %414 = vst.msk [vmem:[%s1115_s25 + $0x28] sm:$0xff] %vm408_vm1, %v376_v11  ;;  %v735_v9 = vld [vmem:[%s1115_s25 + $0xa0] sm:$0xff] (%p1044_p6) }
 0x177   : > { %882 = vst.msk [vmem:[%s1115_s25 + $0xa8] sm:$0xff] %vm408_vm1, %v543_v12 }
 0x178   : > { %704 = vst [vmem:[%s1219_s28 + $0x20] sm:$0xff] (%p1044_p6), %v703_v57 }
 0x179   : > { %736 = vst [vmem:[%s1219_s28 + $0x120] sm:$0xff] (%p1044_p6), %v735_v9 }
 0x17b   : > { %v378_v13 = vpop.f32.mrf.mxu0  ;;  %v545_v14 = vpop.f32.mrf.mxu1 }
 0x17c   : > { %v379_v15 = vadd.f32 %v1111_v52, %v378_v13  ;;  %v546_v16 = vadd.f32 %v1111_v52, %v545_v14 }
 0x17d   : > { %v705_v58 = vld [vmem:[%s1115_s25 + $0x28] sm:$0xff] (%p1044_p6) }
 0x17e   : > { %415 = vst.msk [vmem:[%s1115_s25 + $0x30] sm:$0xff] %vm408_vm1, %v379_v15  ;;  %v737_v10 = vld [vmem:[%s1115_s25 + $0xa8] sm:$0xff] (%p1044_p6) }
 0x17f   : > { %883 = vst.msk [vmem:[%s1115_s25 + $0xb0] sm:$0xff] %vm408_vm1, %v546_v16 }
 0x180   : > { %706 = vst [vmem:[%s1219_s28 + $0x28] sm:$0xff] (%p1044_p6), %v705_v58 }
 0x181   : > { %738 = vst [vmem:[%s1219_s28 + $0x128] sm:$0xff] (%p1044_p6), %v737_v10 }
 0x183   : > { %v381_v17 = vpop.f32.mrf.mxu0  ;;  %v548_v18 = vpop.f32.mrf.mxu1 }
 0x184   : > { %v382_v19 = vadd.f32 %v1111_v52, %v381_v17  ;;  %v549_v20 = vadd.f32 %v1111_v52, %v548_v18 }
 0x185   : > { %v707_v59 = vld [vmem:[%s1115_s25 + $0x30] sm:$0xff] (%p1044_p6) }
 0x186   : > { %416 = vst.msk [vmem:[%s1115_s25 + $0x38] sm:$0xff] %vm408_vm1, %v382_v19  ;;  %v739_v11 = vld [vmem:[%s1115_s25 + $0xb0] sm:$0xff] (%p1044_p6) }
 0x187   : > { %884 = vst.msk [vmem:[%s1115_s25 + $0xb8] sm:$0xff] %vm408_vm1, %v549_v20 }
 0x188   : > { %708 = vst [vmem:[%s1219_s28 + $0x30] sm:$0xff] (%p1044_p6), %v707_v59 }
 0x189   : > { %740 = vst [vmem:[%s1219_s28 + $0x130] sm:$0xff] (%p1044_p6), %v739_v11 }
 0x18d   : > { %v709_v60 = vld [vmem:[%s1115_s25 + $0x38] sm:$0xff] (%p1044_p6) }
 0x18e   : > { %710 = vst [vmem:[%s1219_s28 + $0x38] sm:$0xff] (%p1044_p6), %v709_v60  ;;  %v741_v12 = vld [vmem:[%s1115_s25 + $0xb8] sm:$0xff] (%p1044_p6) }
 0x18f   : > { %742 = vst [vmem:[%s1219_s28 + $0x138] sm:$0xff] (%p1044_p6), %v741_v12 }
 0x191   : > { %v384_v21 = vpop.f32.mrf.mxu2  ;;  %v551_v22 = vpop.f32.mrf.mxu3 }
 0x192   : > { %v385_v23 = vadd.f32 %v1111_v52, %v384_v21  ;;  %v552_v24 = vadd.f32 %v1111_v52, %v551_v22 }
 0x194   : > { %417 = vst.msk [vmem:[%s1115_s25 + $0x40] sm:$0xff] %vm408_vm1, %v385_v23 }
 0x195   : > { %885 = vst.msk [vmem:[%s1115_s25 + $0xc0] sm:$0xff] %vm408_vm1, %v552_v24 }
 0x199   : > { %v387_v25 = vpop.f32.mrf.mxu2  ;;  %v554_v26 = vpop.f32.mrf.mxu3 }
 0x19a   : > { %v388_v27 = vadd.f32 %v1111_v52, %v387_v25  ;;  %v555_v28 = vadd.f32 %v1111_v52, %v554_v26 }
 0x19b   : > { %v711_v61 = vld [vmem:[%s1115_s25 + $0x40] sm:$0xff] (%p1044_p6) }
 0x19c   : > { %418 = vst.msk [vmem:[%s1115_s25 + $0x48] sm:$0xff] %vm408_vm1, %v388_v27  ;;  %v743_v13 = vld [vmem:[%s1115_s25 + $0xc0] sm:$0xff] (%p1044_p6) }
 0x19d   : > { %886 = vst.msk [vmem:[%s1115_s25 + $0xc8] sm:$0xff] %vm408_vm1, %v555_v28 }
 0x19e   : > { %712 = vst [vmem:[%s1219_s28 + $0x40] sm:$0xff] (%p1044_p6), %v711_v61 }
 0x19f   : > { %744 = vst [vmem:[%s1219_s28 + $0x140] sm:$0xff] (%p1044_p6), %v743_v13 }
 0x1a1   : > { %v390_v29 = vpop.f32.mrf.mxu2  ;;  %v557_v30 = vpop.f32.mrf.mxu3 }
 0x1a2   : > { %v391_v31 = vadd.f32 %v1111_v52, %v390_v29  ;;  %v558_v32 = vadd.f32 %v1111_v52, %v557_v30 }
 0x1a3   : > { %v713_v62 = vld [vmem:[%s1115_s25 + $0x48] sm:$0xff] (%p1044_p6) }
 0x1a4   : > { %419 = vst.msk [vmem:[%s1115_s25 + $0x50] sm:$0xff] %vm408_vm1, %v391_v31  ;;  %v745_v14 = vld [vmem:[%s1115_s25 + $0xc8] sm:$0xff] (%p1044_p6) }
 0x1a5   : > { %887 = vst.msk [vmem:[%s1115_s25 + $0xd0] sm:$0xff] %vm408_vm1, %v558_v32 }
 0x1a6   : > { %714 = vst [vmem:[%s1219_s28 + $0x48] sm:$0xff] (%p1044_p6), %v713_v62 }
 0x1a7   : > { %746 = vst [vmem:[%s1219_s28 + $0x148] sm:$0xff] (%p1044_p6), %v745_v14 }
 0x1a9   : > { %v393_v33 = vpop.f32.mrf.mxu2  ;;  %v560_v34 = vpop.f32.mrf.mxu3 }
 0x1aa   : > { %v394_v35 = vadd.f32 %v1111_v52, %v393_v33  ;;  %v561_v36 = vadd.f32 %v1111_v52, %v560_v34 }
 0x1ab   : > { %v715_v63 = vld [vmem:[%s1115_s25 + $0x50] sm:$0xff] (%p1044_p6) }
 0x1ac   : > { %420 = vst.msk [vmem:[%s1115_s25 + $0x58] sm:$0xff] %vm408_vm1, %v394_v35  ;;  %v747_v15 = vld [vmem:[%s1115_s25 + $0xd0] sm:$0xff] (%p1044_p6) }
 0x1ad   : > { %888 = vst.msk [vmem:[%s1115_s25 + $0xd8] sm:$0xff] %vm408_vm1, %v561_v36 }
 0x1ae   : > { %716 = vst [vmem:[%s1219_s28 + $0x50] sm:$0xff] (%p1044_p6), %v715_v63 }
 0x1af   : > { %748 = vst [vmem:[%s1219_s28 + $0x150] sm:$0xff] (%p1044_p6), %v747_v15 }
 0x1b1   : > { %v396_v37 = vpop.f32.mrf.mxu2  ;;  %v563_v38 = vpop.f32.mrf.mxu3 }
 0x1b2   : > { %v397_v39 = vadd.f32 %v1111_v52, %v396_v37  ;;  %v564_v40 = vadd.f32 %v1111_v52, %v563_v38 }
 0x1b3   : > { %v717_v0 = vld [vmem:[%s1115_s25 + $0x58] sm:$0xff] (%p1044_p6) }
 0x1b4   : > { %421 = vst.msk [vmem:[%s1115_s25 + $0x60] sm:$0xff] %vm408_vm1, %v397_v39  ;;  %v749_v16 = vld [vmem:[%s1115_s25 + $0xd8] sm:$0xff] (%p1044_p6) }
 0x1b5   : > { %889 = vst.msk [vmem:[%s1115_s25 + $0xe0] sm:$0xff] %vm408_vm1, %v564_v40 }
 0x1b6   : > { %718 = vst [vmem:[%s1219_s28 + $0x58] sm:$0xff] (%p1044_p6), %v717_v0 }
 0x1b7   : > { %750 = vst [vmem:[%s1219_s28 + $0x158] sm:$0xff] (%p1044_p6), %v749_v16 }
 0x1b9   : > { %v399_v41 = vpop.f32.mrf.mxu2  ;;  %v566_v42 = vpop.f32.mrf.mxu3 }
 0x1ba   : > { %v400_v43 = vadd.f32 %v1111_v52, %v399_v41  ;;  %v567_v44 = vadd.f32 %v1111_v52, %v566_v42 }
 0x1bb   : > { %v719_v1 = vld [vmem:[%s1115_s25 + $0x60] sm:$0xff] (%p1044_p6) }
 0x1bc   : > { %422 = vst.msk [vmem:[%s1115_s25 + $0x68] sm:$0xff] %vm408_vm1, %v400_v43  ;;  %v751_v17 = vld [vmem:[%s1115_s25 + $0xe0] sm:$0xff] (%p1044_p6) }
 0x1bd   : > { %890 = vst.msk [vmem:[%s1115_s25 + $0xe8] sm:$0xff] %vm408_vm1, %v567_v44 }
 0x1be   : > { %720 = vst [vmem:[%s1219_s28 + $0x60] sm:$0xff] (%p1044_p6), %v719_v1 }
 0x1bf   : > { %752 = vst [vmem:[%s1219_s28 + $0x160] sm:$0xff] (%p1044_p6), %v751_v17 }
 0x1c1   : > { %v402_v45 = vpop.f32.mrf.mxu2  ;;  %v569_v46 = vpop.f32.mrf.mxu3 }
 0x1c2   : > { %v403_v47 = vadd.f32 %v1111_v52, %v402_v45  ;;  %v570_v48 = vadd.f32 %v1111_v52, %v569_v46 }
 0x1c3   : > { %v721_v2 = vld [vmem:[%s1115_s25 + $0x68] sm:$0xff] (%p1044_p6) }
 0x1c4   : > { %423 = vst.msk [vmem:[%s1115_s25 + $0x70] sm:$0xff] %vm408_vm1, %v403_v47  ;;  %v753_v18 = vld [vmem:[%s1115_s25 + $0xe8] sm:$0xff] (%p1044_p6) }
 0x1c5   : > { %891 = vst.msk [vmem:[%s1115_s25 + $0xf0] sm:$0xff] %vm408_vm1, %v570_v48 }
 0x1c6   : > { %722 = vst [vmem:[%s1219_s28 + $0x68] sm:$0xff] (%p1044_p6), %v721_v2 }
 0x1c7   : > { %754 = vst [vmem:[%s1219_s28 + $0x168] sm:$0xff] (%p1044_p6), %v753_v18 }
 0x1c9   : > { %v405_v49 = vpop.f32.mrf.mxu2  ;;  %v572_v50 = vpop.f32.mrf.mxu3  ;;  %598 = sbr.rel (!%p1044_p6) target bundleno = 470 (0x1d6), region = 74 }
 0x1ca   : > { %v406_v51 = vadd.f32 %v1111_v52, %v405_v49  ;;  %v573_v53 = vadd.f32 %v1111_v52, %v572_v50  ;;  %v697_v52 = vld [vmem:[%s1115_s25 + $0x8] sm:$0xff] (%p1044_p6) }
 0x1cb   : > { %698 = vst [vmem:[%s1219_s28 + $0x8] sm:$0xff] (%p1044_p6), %v697_v52  ;;  %v723_v3 = vld [vmem:[%s1115_s25 + $0x70] sm:$0xff] (%p1044_p6) }
 0x1cc   : > { %424 = vst.msk [vmem:[%s1115_s25 + $0x78] sm:$0xff] %vm408_vm1, %v406_v51  ;;  %v755_v19 = vld [vmem:[%s1115_s25 + $0xf0] sm:$0xff] (%p1044_p6) }
 0x1cd   : > { %892 = vst.msk [vmem:[%s1115_s25 + $0xf8] sm:$0xff] %vm408_vm1, %v573_v53 }
 0x1ce   : > { %724 = vst [vmem:[%s1219_s28 + $0x70] sm:$0xff] %v723_v3 }
 0x1cf   : > { %756 = vst [vmem:[%s1219_s28 + $0x170] sm:$0xff] %v755_v19 }
 0x1d3   : > { %v725_v4 = vld [vmem:[%s1115_s25 + $0x78] sm:$0xff] }
 0x1d4   : > { %726 = vst [vmem:[%s1219_s28 + $0x78] sm:$0xff] %v725_v4  ;;  %v757_v20 = vld [vmem:[%s1115_s25 + $0xf8] sm:$0xff] }
 0x1d5   : > { %758 = vst [vmem:[%s1219_s28 + $0x178] sm:$0xff] %v757_v20 }
 0x1d6 PF: > { %s13_s16 = sadd.s32 1, %s987_s16   ;;  %s1303_s12 = smov %s975_s13 }
 0x1d7   : > { %p10_p11 = scmp.ge.s32.totalorder %s13_s16, 4   ;;  %s1304_s13 = smov %s1049_s22 }
 0x1d8   : > { %s1305_s14 = smov %s983_s15  ;;  %s1306_s15 = smov %s1308_s17 }
 0x1d9   :  { %12 = sbr.rel (!%p10_p11) target bundleno = 3 (0x3), region = 145 }

</bundles_post_ra>
